<compile_context>
chip_gen: v7x
topology: tpu7x:2x2x1
jax: 0.10.0
libtpu: 0.0.40
codegen_flags: <defaults>
</compile_context>

<pallas_src>
import functools

import jax
import jax.numpy as jnp
from jax import lax
from jax.experimental import pallas as pl
from jax.experimental.pallas import tpu as pltpu


def _round_up(x, k):
    return (x + k - 1) // k * k


def _choose_bag_tile(num_bags):
    """Bags per grid step (multiple of 8).  For <=512 bags aim for >=2 grid
    steps so the 'parallel' bag axis can actually use both TensorCores on
    v7x; above that cap at 256."""
    if num_bags >= 512:
        return 256
    if num_bags <= 8:
        return 8
    return _round_up(-(-num_bags // 2), 8)


def _choose_row_tile(n_pad):
    """Table-row tile (reduction axis of the gather matmul).  n_pad is a
    multiple of 128; pick the largest lane-friendly divisor <= 512 so the
    table is streamed instead of held (double-buffered) in VMEM."""
    for t in (512, 384, 256, 128):
        if n_pad % t == 0:
            return t
    return n_pad


def _vmem_limit(per_step_bytes):
    """Per-generation VMEM limit: generous headroom over the per-step estimate,
    capped at ~7/8 of physical VMEM (~112 MiB on v5e/v6e, ~56 MiB on v7x)."""
    try:
        info = pltpu.get_tpu_info()
        cap = int(getattr(info, "vmem_capacity_bytes", 0)) or 64 * 1024 * 1024
    except Exception:  # conservative (v7x-sized) fallback
        cap = 64 * 1024 * 1024
    hard_cap = cap * 7 // 8
    want = max(per_step_bytes * 3 // 2, 32 * 1024 * 1024)
    return int(min(want, hard_cap))


def _gather_kernel(idx_ref, w_ref, p_ref):
    """P[i, :] += [indices[i] == row j of this table tile] * W[j, :].

    grid = (L tiles, N tiles); the N axis is a reduction accumulated directly
    into the resident f32 output block.  Out-of-range / padded (-1) indices
    match no row, so there is never an out-of-bounds read."""
    k = pl.program_id(1)
    tl = idx_ref.shape[0]
    tn = w_ref.shape[0]

    @pl.when(k == 0)
    def _():
        p_ref[...] = jnp.zeros_like(p_ref)

    rows = k * tn + lax.broadcasted_iota(jnp.int32, (tl, tn), 1)
    onehot = (idx_ref[...] == rows).astype(jnp.float32)          # (tl, tn)
    p_ref[...] += jnp.dot(onehot, w_ref[...],
                          preferred_element_type=jnp.float32)


def _segment_sum_kernel(lo_ref, hi_ref, p_ref, out_ref):
    """out[t, :] += sum_{lo[t] <= i < hi[t], i in this L tile} P[i, :].

    grid = (bag tiles, L tiles); bag axis is 'parallel' (megacore), L axis is
    a reduction accumulated into the resident f32 output block."""
    k = pl.program_id(1)
    tb = out_ref.shape[0]
    tl = p_ref.shape[0]

    @pl.when(k == 0)
    def _():
        out_ref[...] = jnp.zeros_like(out_ref)

    pos = k * tl + lax.broadcasted_iota(jnp.int32, (tb, tl), 1)
    a = jnp.logical_and(pos >= lo_ref[...], pos < hi_ref[...]).astype(jnp.float32)
    out_ref[...] += jnp.dot(a, p_ref[...], preferred_element_type=jnp.float32)


@functools.partial(jax.jit, static_argnames=("embedding_size",))
def embedding_bag_sum_fwd(weight_padded, indices, offsets, valid_count,
                          *, embedding_size):
    """Forward of torch.embedding_bag_sum_fwd.

    weight_padded : (n_pad, m_pad) float32  zero-padded table (n_pad % 128 == 0)
    indices       : (L,)  int32   flat index stream (possibly padded)
    offsets       : (num_bags,) int32  bag b spans indices[offsets[b]:offsets[b+1]]
                    (last bag runs to end of stream), clamped to valid_count
    valid_count   : (1,) int32
    returns       : (num_bags, embedding_size) float32
    """
    n_pad, m_pad = weight_padded.shape
    num_bags = offsets.shape[0]
    L = indices.shape[0]

    # ---- tile selection (all static under jit) ------------------------------
    tb = _choose_bag_tile(num_bags)
    nb_pad = _round_up(num_bags, tb)

    l_align = 256 if L > 128 else 128          # 256-wide MXU fill on v6e/v7x
    tl = min(512, _round_up(max(L, 1), l_align))
    l_pad = _round_up(max(L, 1), tl)

    tn = _choose_row_tile(n_pad)

    l_tiles = l_pad // tl
    n_tiles = n_pad // tn
    bag_tiles = nb_pad // tb

    # ---- prep: bag bounds clamped by valid_count ----------------------------
    valid = valid_count.reshape(()).astype(jnp.int32)
    offsets = offsets.astype(jnp.int32)
    off_ext = jnp.concatenate([offsets, jnp.full((1,), L, jnp.int32)])
    lo = jnp.minimum(off_ext[:-1], valid)
    hi = jnp.minimum(off_ext[1:], valid)
    lo = jnp.pad(lo, (0, nb_pad - num_bags)).reshape(nb_pad, 1)
    hi = jnp.pad(hi, (0, nb_pad - num_bags)).reshape(nb_pad, 1)

    idx2d = jnp.pad(indices.astype(jnp.int32), (0, l_pad - L),
                    constant_values=-1).reshape(l_pad, 1)

    # ---- kernel 1: gather (P = onehot(indices) @ W), run once ---------------
    gather_vmem = 4 * (2 * tl + 2 * tn * m_pad + 2 * tl * m_pad + 2 * tl * tn)
    p = pl.pallas_call(
        _gather_kernel,
        out_shape=jax.ShapeDtypeStruct((l_pad, m_pad), jnp.float32),
        grid_spec=pltpu.PrefetchScalarGridSpec(
            num_scalar_prefetch=0,
            grid=(l_tiles, n_tiles),
            in_specs=[
                pl.BlockSpec((tl, 1), lambda i, k: (i, 0)),        # indices
                pl.BlockSpec((tn, m_pad), lambda i, k: (k, 0)),    # table tile
            ],
            out_specs=pl.BlockSpec((tl, m_pad), lambda i, k: (i, 0)),
        ),
        compiler_params=pltpu.CompilerParams(
            dimension_semantics=("parallel", "arbitrary"),
            vmem_limit_bytes=_vmem_limit(gather_vmem),
        ),
        cost_estimate=pl.CostEstimate(
            flops=int(2 * l_pad * n_pad * m_pad),
            transcendentals=0,
            bytes_accessed=int(4 * (l_tiles * n_pad * m_pad
                                    + l_pad + l_pad * m_pad))),
    )(idx2d, weight_padded)

    # ---- kernel 2: segment sum (out = A @ P), bag axis parallel -------------
    seg_vmem = 4 * (4 * tb + 2 * tl * m_pad + 2 * tb * m_pad + 2 * tb * tl)
    out = pl.pallas_call(
        _segment_sum_kernel,
        out_shape=jax.ShapeDtypeStruct((nb_pad, m_pad), jnp.float32),
        grid_spec=pltpu.PrefetchScalarGridSpec(
            num_scalar_prefetch=0,
            grid=(bag_tiles, l_tiles),
            in_specs=[
                pl.BlockSpec((tb, 1), lambda t, k: (t, 0)),        # lo
                pl.BlockSpec((tb, 1), lambda t, k: (t, 0)),        # hi
                pl.BlockSpec((tl, m_pad), lambda t, k: (k, 0)),    # gathered rows
            ],
            out_specs=pl.BlockSpec((tb, m_pad), lambda t, k: (t, 0)),
        ),
        compiler_params=pltpu.CompilerParams(
            dimension_semantics=("parallel", "arbitrary"),
            vmem_limit_bytes=_vmem_limit(seg_vmem),
        ),
        cost_estimate=pl.CostEstimate(
            flops=int(2 * nb_pad * l_pad * m_pad),
            transcendentals=0,
            bytes_accessed=int(4 * (bag_tiles * l_pad * m_pad
                                    + nb_pad * m_pad + 4 * nb_pad))),
    )(lo, hi, p)

    return out[:num_bags, :embedding_size]


class HabanaEmbeddingBagPallas:
    """JAX/Pallas equivalent of HabanaEmbeddingBag (forward pass only)."""

    def __init__(self, table_len, embedding_size, instance, key):
        n, m = table_len, embedding_size
        bound = (1.0 / n) ** 0.5
        # deterministic init mirroring np.random.uniform(-sqrt(1/n), sqrt(1/n))
        self.weight = jax.random.uniform(
            key, (n, m), dtype=jnp.float32, minval=-bound, maxval=bound)
        self.table_len = n
        self.embedding_size = m
        n_pad = _round_up(n, 128)
        m_pad = _round_up(m, 128)
        # zero-pad once at init (MXU-/lane-friendly shapes)
        self.weight_padded = jnp.pad(
            self.weight, ((0, n_pad - n), (0, m_pad - m)))
        self.instance = instance

    def forward(self, indices, offsets, valid_count_fwd,
                indices_bwd=None, offsets_bwd=None, valid_count_bwd=None,
                grad_weights=None, instance=None):
        # TODO(synk): backward-only args are ignored (no gradient path).
        return embedding_bag_sum_fwd(
            self.weight_padded,
            jnp.asarray(indices, jnp.int32),
            jnp.asarray(offsets, jnp.int32),
            jnp.asarray(valid_count_fwd, jnp.int32).reshape((1,)),
            embedding_size=self.embedding_size,
        )

    __call__ = forward


if __name__ == "__main__":
    key = jax.random.PRNGKey(0)
    k_w, k_idx = jax.random.split(key)

    table_len = 64          # n
    embedding_size = 128    # m (lane-aligned)
    num_bags = 8
    num_indices = 32        # index stream length (last 2 beyond valid_count)
    valid = 30

    bag = HabanaEmbeddingBagPallas(table_len, embedding_size, instance=0, key=k_w)

    indices = jax.random.randint(k_idx, (num_indices,), 0, table_len,
                                 dtype=jnp.int32)
    # variable-length bags, including one empty bag
    offsets = jnp.array([0, 3, 3, 7, 12, 18, 20, 27], dtype=jnp.int32)
    valid_count_fwd = jnp.array(valid, dtype=jnp.int32)

    out = bag(indices, offsets, valid_count_fwd,
              indices_bwd=indices, offsets_bwd=offsets,
              valid_count_bwd=valid_count_fwd, grad_weights=None, instance=0)
    out = jax.block_until_ready(out)
    assert out.shape == (num_bags, embedding_size)

    # pure-JAX reference: per-bag sum with valid_count clamp
    off_ext = [int(o) for o in offsets] + [num_indices]
    rows = []
    for b in range(num_bags):
        s, e = min(off_ext[b], valid), min(off_ext[b + 1], valid)
        if e > s:
            rows.append(bag.weight[indices[s:e]].sum(axis=0))
        else:
            rows.append(jnp.zeros((embedding_size,), jnp.float32))
    ref = jnp.stack(rows)

    err = float(jnp.max(jnp.abs(out - ref)))
    assert jnp.allclose(out, ref, atol=1e-4, rtol=1e-5), err

    print("KERNEL_OK")
</pallas_src>

<mosaic_0001>
module attributes {stable_mosaic.version = 11 : i64} {
  func.func @_gather_kernel(%arg0: i32, %arg1: i32, %arg2: memref<128x1xi32, #tpu.memory_space<vmem>>, %arg3: memref<128x128xf32, #tpu.memory_space<vmem>>, %arg4: memref<128x128xf32, #tpu.memory_space<vmem>>) attributes {dimension_semantics = [#tpu.dimension_semantics<parallel>, #tpu.dimension_semantics<arbitrary>], iteration_bounds = array<i64: 1, 1>, scalar_prefetch = 0 : i64, scratch_operands = 0 : i64, tpu.core_type = #tpu.core_type<tc>, window_params = [{transform_indices = @transform_0, window_bounds = array<i64: 128, 1>}, {transform_indices = @transform_1, window_bounds = array<i64: 128, 128>}, {transform_indices = @transform_2, window_bounds = array<i64: 128, 128>}]} {
    %c0_i32 = arith.constant 0 : i32
    %0 = arith.cmpi eq, %arg1, %c0_i32 : i32
    %1 = arith.extui %0 : i1 to i32
    %c0_i32_0 = arith.constant 0 : i32
    %2 = arith.cmpi ne, %1, %c0_i32_0 : i32
    scf.if %2 {
      %cst_8 = arith.constant 0.000000e+00 : f32
      %17 = vector.broadcast %cst_8 : f32 to vector<128x128xf32>
      %c0_9 = arith.constant 0 : index
      %c0_10 = arith.constant 0 : index
      %18 = vector.load %arg4[%c0_9, %c0_10] : memref<128x128xf32, #tpu.memory_space<vmem>>, vector<128x128xf32>
      tpu.vector_store %arg4[%c0_9, %c0_10], %17 {strides = array<i32>} : memref<128x128xf32, #tpu.memory_space<vmem>>, vector<128x128xf32>,
    } else {
    }
    %c128_i32 = arith.constant 128 : i32
    %3 = arith.muli %arg1, %c128_i32 : i32
    %4 = tpu.iota {dimensions = array<i32: 1>} : vector<128x128xi32>
    %5 = vector.broadcast %3 : i32 to vector<128x128xi32>
    %6 = arith.addi %5, %4 : vector<128x128xi32>
    %c0 = arith.constant 0 : index
    %c0_1 = arith.constant 0 : index
    %7 = vector.load %arg2[%c0, %c0_1] : memref<128x1xi32, #tpu.memory_space<vmem>>, vector<128x1xi32>
    %8 = vector.broadcast %7 : vector<128x1xi32> to vector<128x128xi32>
    %9 = arith.cmpi eq, %8, %6 : vector<128x128xi32>
    %10 = arith.extui %9 : vector<128x128xi1> to vector<128x128xi32>
    %11 = arith.sitofp %10 : vector<128x128xi32> to vector<128x128xf32>
    %c0_2 = arith.constant 0 : index
    %c0_3 = arith.constant 0 : index
    %12 = vector.load %arg4[%c0_2, %c0_3] : memref<128x128xf32, #tpu.memory_space<vmem>>, vector<128x128xf32>
    %c0_4 = arith.constant 0 : index
    %c0_5 = arith.constant 0 : index
    %13 = vector.load %arg3[%c0_4, %c0_5] : memref<128x128xf32, #tpu.memory_space<vmem>>, vector<128x128xf32>
    %cst = arith.constant dense<0.000000e+00> : vector<128x128xf32>
    %14 = tpu.matmul %11, %13, %cst {dimension_numbers = #tpu.dot_dimension_numbers<[1], [0], [0], [1], [0, 0, 1, 1], [], []>} : vector<128x128xf32>, vector<128x128xf32>, vector<128x128xf32> -> vector<128x128xf32>
    %15 = arith.addf %12, %14 : vector<128x128xf32>
    %c0_6 = arith.constant 0 : index
    %c0_7 = arith.constant 0 : index
    %16 = vector.load %arg4[%c0_6, %c0_7] : memref<128x128xf32, #tpu.memory_space<vmem>>, vector<128x128xf32>
    tpu.vector_store %arg4[%c0_6, %c0_7], %15 {strides = array<i32>} : memref<128x128xf32, #tpu.memory_space<vmem>>, vector<128x128xf32>,
    return
  }
  func.func @transform_0(%arg0: i32, %arg1: i32) -> (i32, i32) {
    %c0_i32 = arith.constant 0 : i32
    %c0_i32_0 = arith.constant 0 : i32
    return %arg0, %c0_i32 : i32, i32
  }
  func.func @transform_1(%arg0: i32, %arg1: i32) -> (i32, i32) {
    %c0_i32 = arith.constant 0 : i32
    %c0_i32_0 = arith.constant 0 : i32
    return %arg1, %c0_i32 : i32, i32
  }
  func.func @transform_2(%arg0: i32, %arg1: i32) -> (i32, i32) {
    %c0_i32 = arith.constant 0 : i32
    %c0_i32_0 = arith.constant 0 : i32
    return %arg0, %c0_i32 : i32, i32
  }
}

module attributes {stable_mosaic.version = 11 : i64} {
  func.func @_segment_sum_kernel(%arg0: i32, %arg1: i32, %arg2: memref<8x1xi32, #tpu.memory_space<vmem>>, %arg3: memref<8x1xi32, #tpu.memory_space<vmem>>, %arg4: memref<128x128xf32, #tpu.memory_space<vmem>>, %arg5: memref<8x128xf32, #tpu.memory_space<vmem>>) attributes {dimension_semantics = [#tpu.dimension_semantics<parallel>, #tpu.dimension_semantics<arbitrary>], iteration_bounds = array<i64: 1, 1>, scalar_prefetch = 0 : i64, scratch_operands = 0 : i64, tpu.core_type = #tpu.core_type<tc>, window_params = [{transform_indices = @transform_0, window_bounds = array<i64: 8, 1>}, {transform_indices = @transform_1, window_bounds = array<i64: 8, 1>}, {transform_indices = @transform_2, window_bounds = array<i64: 128, 128>}, {transform_indices = @transform_3, window_bounds = array<i64: 8, 128>}]} {
    %c0_i32 = arith.constant 0 : i32
    %0 = arith.cmpi eq, %arg1, %c0_i32 : i32
    %1 = arith.extui %0 : i1 to i32
    %c0_i32_0 = arith.constant 0 : i32
    %2 = arith.cmpi ne, %1, %c0_i32_0 : i32
    scf.if %2 {
      %cst_10 = arith.constant 0.000000e+00 : f32
      %21 = vector.broadcast %cst_10 : f32 to vector<8x128xf32>
      %c0_11 = arith.constant 0 : index
      %c0_12 = arith.constant 0 : index
      %22 = vector.load %arg5[%c0_11, %c0_12] : memref<8x128xf32, #tpu.memory_space<vmem>>, vector<8x128xf32>
      tpu.vector_store %arg5[%c0_11, %c0_12], %21 {strides = array<i32>} : memref<8x128xf32, #tpu.memory_space<vmem>>, vector<8x128xf32>,
    } else {
    }
    %c128_i32 = arith.constant 128 : i32
    %3 = arith.muli %arg1, %c128_i32 : i32
    %4 = tpu.iota {dimensions = array<i32: 1>} : vector<8x128xi32>
    %5 = vector.broadcast %3 : i32 to vector<8x128xi32>
    %6 = arith.addi %5, %4 : vector<8x128xi32>
    %c0 = arith.constant 0 : index
    %c0_1 = arith.constant 0 : index
    %7 = vector.load %arg2[%c0, %c0_1] : memref<8x1xi32, #tpu.memory_space<vmem>>, vector<8x1xi32>
    %8 = vector.broadcast %7 : vector<8x1xi32> to vector<8x128xi32>
    %9 = arith.cmpi sge, %6, %8 : vector<8x128xi32>
    %c0_2 = arith.constant 0 : index
    %c0_3 = arith.constant 0 : index
    %10 = vector.load %arg3[%c0_2, %c0_3] : memref<8x1xi32, #tpu.memory_space<vmem>>, vector<8x1xi32>
    %11 = vector.broadcast %10 : vector<8x1xi32> to vector<8x128xi32>
    %12 = arith.cmpi slt, %6, %11 : vector<8x128xi32>
    %13 = arith.andi %9, %12 : vector<8x128xi1>
    %14 = arith.extui %13 : vector<8x128xi1> to vector<8x128xi32>
    %15 = arith.sitofp %14 : vector<8x128xi32> to vector<8x128xf32>
    %c0_4 = arith.constant 0 : index
    %c0_5 = arith.constant 0 : index
    %16 = vector.load %arg5[%c0_4, %c0_5] : memref<8x128xf32, #tpu.memory_space<vmem>>, vector<8x128xf32>
    %c0_6 = arith.constant 0 : index
    %c0_7 = arith.constant 0 : index
    %17 = vector.load %arg4[%c0_6, %c0_7] : memref<128x128xf32, #tpu.memory_space<vmem>>, vector<128x128xf32>
    %cst = arith.constant dense<0.000000e+00> : vector<8x128xf32>
    %18 = tpu.matmul %15, %17, %cst {dimension_numbers = #tpu.dot_dimension_numbers<[1], [0], [0], [1], [0, 0, 1, 1], [], []>} : vector<8x128xf32>, vector<128x128xf32>, vector<8x128xf32> -> vector<8x128xf32>
    %19 = arith.addf %16, %18 : vector<8x128xf32>
    %c0_8 = arith.constant 0 : index
    %c0_9 = arith.constant 0 : index
    %20 = vector.load %arg5[%c0_8, %c0_9] : memref<8x128xf32, #tpu.memory_space<vmem>>, vector<8x128xf32>
    tpu.vector_store %arg5[%c0_8, %c0_9], %19 {strides = array<i32>} : memref<8x128xf32, #tpu.memory_space<vmem>>, vector<8x128xf32>,
    return
  }
  func.func @transform_0(%arg0: i32, %arg1: i32) -> (i32, i32) {
    %c0_i32 = arith.constant 0 : i32
    %c0_i32_0 = arith.constant 0 : i32
    return %arg0, %c0_i32 : i32, i32
  }
  func.func @transform_1(%arg0: i32, %arg1: i32) -> (i32, i32) {
    %c0_i32 = arith.constant 0 : i32
    %c0_i32_0 = arith.constant 0 : i32
    return %arg0, %c0_i32 : i32, i32
  }
  func.func @transform_2(%arg0: i32, %arg1: i32) -> (i32, i32) {
    %c0_i32 = arith.constant 0 : i32
    %c0_i32_0 = arith.constant 0 : i32
    return %arg1, %c0_i32 : i32, i32
  }
  func.func @transform_3(%arg0: i32, %arg1: i32) -> (i32, i32) {
    %c0_i32 = arith.constant 0 : i32
    %c0_i32_0 = arith.constant 0 : i32
    return %arg0, %c0_i32 : i32, i32
  }
}

</mosaic_0001>

<bundles_post_ra>
// kernel: embedding_bag_sum_fwd.3
= control target key start
LH: loop header
LB: loop body
LE: loop exit
PB: predicated region body
PF: predicated region fallthrough
CT: control target
= control target key end

     0   :  { %v250_v2 = vmov 0   ;;  %v251_v3 = vmov 0.0|0.0   ;;  %s342_s0 = inlined_call_operand.vmem [shape: s32[8,1], index: 0, kind: input, shape index: {}]   ;;  %s343_s1 = inlined_call_operand.vmem [shape: s32[8,1], index: 1, kind: input, shape index: {}]   ;;  %s344_s2 = inlined_call_operand.vmem [shape: f32[128,128], index: 2, kind: input, shape index: {}]   ;;  %s345_s3 = inlined_call_operand.hbm [shape: f32[8,128], index: 3, kind: output, shape index: {}]  }
   0x1   :  { %v25_v0 = vld [vmem:[%s342_s0] sm:$0xff]  ;;  %225 = vset.pattern.permute.xlu0 %v250_v2  ;;  %195 = vmatprep.subr.bf16.mxu0 %v251_v3  ;;  %v40_v4 = vld [vmem:[%s344_s2 + $0x8] sm:$0xff]  ;;  %v41_v5 = vld [vmem:[%s344_s2 + $0x10] sm:$0xff] }
   0x2   :  { %v39_v1 = vld [vmem:[%s344_s2] sm:$0xff]  ;;  %v42_v6 = vld [vmem:[%s344_s2 + $0x18] sm:$0xff]  ;;  %27 = vperm.xlu0 %225, %v25_v0   ;;  %v44_v11 = vld [vmem:[%s344_s2 + $0x28] sm:$0xff] }
   0x3   :  { %v196_v7 = vpack.c.bf16 %v40_v4, %v39_v1  ;;  %v30_v8 = vld [vmem:[%s343_s1] sm:$0xff]  ;;  %v199_v9 = vpack.c.bf16 %v42_v6, %v41_v5 }
   0x4   :  { %v43_v10 = vld [vmem:[%s344_s2 + $0x20] sm:$0xff] }
   0x5   :  { %197 = vmatpush3.bf16.msra.mxu0 %v196_v7 }
   0x6   :  { %198 = vmatprep.subr.bf16.mxu0 %v251_v3  ;;  %32 = vperm.xlu0 %225, %v30_v8  }
   0x7   :  { %8 = vsyncpa [#allocation3], 0  ;;  %vm252_vm0 = vmmov 0   ;;  %v253_v12 = vmov 0.0   ;;  %v202_v13 = vpack.c.bf16 %v44_v11, %v43_v10  ;;  %v45_v14 = vld [vmem:[%s344_s2 + $0x30] sm:$0xff]  ;;  %v46_v15 = vld [vmem:[%s344_s2 + $0x38] sm:$0xff]  ;;  %v21_v29 = vlaneseq }
   0x8   :  { %192 = vmatprep.mubr.msk.f32.mxu0 %vm252_vm0, %v253_v12  ;;  %v205_v16 = vpack.c.bf16 %v46_v15, %v45_v14  ;;  %v47_v17 = vld [vmem:[%s344_s2 + $0x40] sm:$0xff]  ;;  %v48_v18 = vld [vmem:[%s344_s2 + $0x48] sm:$0xff]  ;;  %v49_v20 = vld [vmem:[%s344_s2 + $0x50] sm:$0xff]  ;;  %v254_v33 = vmov 1.0   ;;  %s255_s19 = smov [#allocation2]  }
   0x9   :  { %200 = vmatpush3.bf16.msra.mxu0 %v199_v9  ;;  %v208_v19 = vpack.c.bf16 %v48_v18, %v47_v17  ;;  %v50_v21 = vld [vmem:[%s344_s2 + $0x58] sm:$0xff]  ;;  %v51_v23 = vld [vmem:[%s344_s2 + $0x60] sm:$0xff]  ;;  %v52_v24 = vld [vmem:[%s344_s2 + $0x68] sm:$0xff]  ;;  %v22_v31 = vand.u32 127, %v21_v29  ;;  %s133_s20 = sshll.u32 %s255_s19, 4  ;;  %s134_s20 = int_to_ptr.vmem [resolvable:$true] %s133_s20 }
   0xa   :  { %201 = vmatprep.subr.bf16.mxu0 %v251_v3  ;;  %v211_v22 = vpack.c.bf16 %v50_v21, %v49_v20  ;;  %v214_v25 = vpack.c.bf16 %v52_v24, %v51_v23  ;;  %v53_v26 = vld [vmem:[%s344_s2 + $0x70] sm:$0xff]  ;;  %v54_v27 = vld [vmem:[%s344_s2 + $0x78] sm:$0xff]  ;;  %s226_s2 = scalar_lea.vmem %s134_s20, 128  ;;  %p231_p1 = scmp.lt.s32.totalorder %s134_s20, %s134_s20 }
   0xb   :  { %v217_v28 = vpack.c.bf16 %v54_v27, %v53_v26  ;;  %p227_p0 = scmp.ne.s32.totalorder %s134_s20, %s226_s2  ;;  %p232_p2 = scmp.lt.s32.totalorder %s226_s2, %s226_s2 }
   0xd   :  { %203 = vmatpush3.bf16.msra.mxu0 %v202_v13  ;;  %p233_p3 = por %p232_p2, %p231_p1 }
   0xe   :  { %204 = vmatprep.subr.bf16.mxu0 %v251_v3 }
   0xf   :  { %p234_p4 = pnand %p233_p3, %p227_p0 }
  0x11   :  { %206 = vmatpush3.bf16.msra.mxu0 %v205_v16 }
  0x12   :  { %207 = vmatprep.subr.bf16.mxu0 %v251_v3 }
  0x15   :  { %209 = vmatpush3.bf16.msra.mxu0 %v208_v19 }
  0x16   :  { %210 = vmatprep.subr.bf16.mxu0 %v251_v3 }
  0x19   :  { %212 = vmatpush3.bf16.msra.mxu0 %v211_v22 }
  0x1a   :  { %213 = vmatprep.subr.bf16.mxu0 %v251_v3 }
  0x1d   :  { %215 = vmatpush3.bf16.msra.mxu0 %v214_v25 }
  0x1e   :  { %216 = vmatprep.subr.bf16.mxu0 %v251_v3 }
  0x21   :  { %218 = vmatpush3.bf16.msra.mxu0 %v217_v28 }
  0x81   :  { %v28_v30 = vpop.permute.xlu0 %27 }
  0x82   :  { %vm29_vm1 = vcmp.ge.s32.totalorder %v22_v31, %v28_v30 }
  0x85   :  { %v33_v32 = vpop.permute.xlu0 %32 }
  0x86   :  { %vm34_vm2 = vcmp.lt.s32.totalorder %v22_v31, %v33_v32 }
  0x87   :  { %vm35_vm3 = vmand %vm29_vm1, %vm34_vm2 }
  0x88   :  { %193 = vmatmul.mubr.msk.f32.vlgmr.msra.gmra.mrb[0].mxu0 %vm35_vm3, %v254_v33 }
 0x15b   :  { %v121_v34 = vpop.f32.mrb[0].mxu0 }
 0x15c   :  { %v194_v35 = vpop.f32.mrb[1].mxu0  ;;  %126 = vst [vmem:[#allocation2] sm:$0xff] %v121_v34 }
 0x15d   :  { %237 = shalt.err (!%p234_p4)
}
 0x15e   :  { %s238_s22 = scalar_lea.hbm %s345_s3, 128 }
 0x15f   :  { %p239_p5 = scmp.ne.s32.totalorder %s345_s3, %s238_s22  ;;  %p242_p6 = scmp.lt.u32.totalorder %s238_s22, %s345_s3 }
 0x161   :  { %p244_p7 = pnand %p242_p6, %p239_p5 }
 0x163   :  { %247 = shalt.err (!%p244_p7)
}
 0x164   :  { %136 = dma.vmem_to_hbm [thread:$0]  %s134_s20, 128, %s345_s3, [#allocation3]  }
 0x165   :  { %248 = dma.done.wait [#allocation3], 128  }
 0x166   :  { %249 = vsyncadd [#allocation3], 4294967168 }
 0x167   :  { %140 = vsyncpa [#allocation3], 1 }

// kernel: embedding_bag_sum_fwd.2
= control target key start
LH: loop header
LB: loop body
LE: loop exit
PB: predicated region body
PF: predicated region fallthrough
CT: control target
= control target key end

     0   :  { %v534_v0 = vmov 0   ;;  %v32_v41 = vlaneseq  ;;  %v535_v45 = vmov 1.0   ;;  %s695_s0 = inlined_call_operand.vmem [shape: s32[128,1], index: 0, kind: input, shape index: {}]   ;;  %s696_s1 = inlined_call_operand.vmem [shape: f32[128,128], index: 1, kind: input, shape index: {}]   ;;  %s697_s2 = inlined_call_operand.vmem [shape: f32[128,128], index: 2, kind: output, shape index: {}]  }
   0x1   :  { %533 = vset.pattern.permute.xlu1 %v534_v0  ;;  %532 = vset.pattern.permute.xlu0 %v534_v0  ;;  %v37_v1 = vld [vmem:[%s695_s0 + $0x8] sm:$0xff]  ;;  %v36_v2 = vld [vmem:[%s695_s0] sm:$0xff]  ;;  %v46_v5 = vld [vmem:[%s695_s0 + $0x50] sm:$0xff] }
   0x2   :  { %56 = vperm.xlu1 %533, %v37_v1   ;;  %53 = vperm.xlu0 %532, %v36_v2   ;;  %v45_v3 = vld [vmem:[%s695_s0 + $0x48] sm:$0xff]  ;;  %v44_v4 = vld [vmem:[%s695_s0 + $0x40] sm:$0xff]  ;;  %v38_v8 = vld [vmem:[%s695_s0 + $0x10] sm:$0xff]  ;;  %v33_v42 = vand.u32 127, %v32_v41 }
   0x3   :  { %v164_v6 = vld [vmem:[%s696_s1] sm:$0xff]  ;;  %v165_v7 = vld [vmem:[%s696_s1 + $0x8] sm:$0xff]  ;;  %v166_v10 = vld [vmem:[%s696_s1 + $0x10] sm:$0xff] }
   0x4   :  { %v481_v9 = vpack.c.bf16 %v165_v7, %v164_v6  ;;  %v167_v11 = vld [vmem:[%s696_s1 + $0x18] sm:$0xff]  ;;  %v168_v13 = vld [vmem:[%s696_s1 + $0x20] sm:$0xff]  ;;  %v169_v14 = vld [vmem:[%s696_s1 + $0x28] sm:$0xff] }
   0x5   :  { %v485_v12 = vpack.c.bf16 %v167_v11, %v166_v10  ;;  %v47_v15 = vld [vmem:[%s695_s0 + $0x58] sm:$0xff]  ;;  %v489_v17 = vpack.c.bf16 %v169_v14, %v168_v13  ;;  %v170_v18 = vld [vmem:[%s696_s1 + $0x30] sm:$0xff]  ;;  %v48_v20 = vld [vmem:[%s695_s0 + $0x60] sm:$0xff] }
   0x6   :  { %80 = vperm.xlu1 %533, %v45_v3   ;;  %77 = vperm.xlu0 %532, %v44_v4   ;;  %v39_v16 = vld [vmem:[%s695_s0 + $0x18] sm:$0xff]  ;;  %v40_v21 = vld [vmem:[%s695_s0 + $0x20] sm:$0xff]  ;;  %v173_v24 = vld [vmem:[%s696_s1 + $0x48] sm:$0xff] }
   0x7   :  { %482 = vmatprep.subr.bf16.mxu0 %v481_v9  ;;  %513 = vmatprep.subr.bf16.mxu1 %v481_v9  ;;  %v171_v19 = vld [vmem:[%s696_s1 + $0x38] sm:$0xff]  ;;  %v172_v23 = vld [vmem:[%s696_s1 + $0x40] sm:$0xff]  ;;  %v49_v25 = vld [vmem:[%s695_s0 + $0x68] sm:$0xff] }
   0x8   :  { %484 = vmatpush3.bf16.msra.mxu0 %v481_v9  ;;  %521 = vmatpush3.bf16.msra.mxu1 %v481_v9  ;;  %v493_v22 = vpack.c.bf16 %v171_v19, %v170_v18  ;;  %v41_v26 = vld [vmem:[%s695_s0 + $0x28] sm:$0xff]  ;;  %v497_v27 = vpack.c.bf16 %v173_v24, %v172_v23  ;;  %v174_v28 = vld [vmem:[%s696_s1 + $0x50] sm:$0xff]  ;;  %v175_v29 = vld [vmem:[%s696_s1 + $0x58] sm:$0xff] }
   0x9   :  { %486 = vmatprep.subr.bf16.mxu0 %v485_v12  ;;  %514 = vmatprep.subr.bf16.mxu1 %v485_v12  ;;  %v50_v30 = vld [vmem:[%s695_s0 + $0x70] sm:$0xff]  ;;  %v501_v32 = vpack.c.bf16 %v175_v29, %v174_v28  ;;  %v176_v33 = vld [vmem:[%s696_s1 + $0x60] sm:$0xff]  ;;  %v177_v34 = vld [vmem:[%s696_s1 + $0x68] sm:$0xff] }
   0xa   :  { %83 = vperm.xlu1 %533, %v46_v5   ;;  %59 = vperm.xlu0 %532, %v38_v8   ;;  %v42_v31 = vld [vmem:[%s695_s0 + $0x30] sm:$0xff]  ;;  %v51_v35 = vld [vmem:[%s695_s0 + $0x78] sm:$0xff]  ;;  %v505_v37 = vpack.c.bf16 %v177_v34, %v176_v33 }
   0xb   :  { %v43_v36 = vld [vmem:[%s695_s0 + $0x38] sm:$0xff]  ;;  %v178_v38 = vld [vmem:[%s696_s1 + $0x70] sm:$0xff] }
   0xc   :  { %488 = vmatpush3.bf16.msra.mxu0 %v485_v12  ;;  %522 = vmatpush3.bf16.msra.mxu1 %v485_v12  ;;  %v179_v39 = vld [vmem:[%s696_s1 + $0x78] sm:$0xff] }
   0xd   :  { %490 = vmatprep.subr.bf16.mxu0 %v489_v17  ;;  %515 = vmatprep.subr.bf16.mxu1 %v489_v17  ;;  %v509_v40 = vpack.c.bf16 %v179_v39, %v178_v38 }
   0xe   :  { %86 = vperm.xlu1 %533, %v47_v15   ;;  %62 = vperm.xlu0 %532, %v39_v16  }
  0x10   :  { %492 = vmatpush3.bf16.msra.mxu0 %v489_v17  ;;  %523 = vmatpush3.bf16.msra.mxu1 %v489_v17 }
  0x11   :  { %494 = vmatprep.subr.bf16.mxu0 %v493_v22  ;;  %516 = vmatprep.subr.bf16.mxu1 %v493_v22 }
  0x12   :  { %89 = vperm.xlu1 %533, %v48_v20   ;;  %65 = vperm.xlu0 %532, %v40_v21  }
  0x14   :  { %496 = vmatpush3.bf16.msra.mxu0 %v493_v22  ;;  %524 = vmatpush3.bf16.msra.mxu1 %v493_v22 }
  0x15   :  { %498 = vmatprep.subr.bf16.mxu0 %v497_v27  ;;  %517 = vmatprep.subr.bf16.mxu1 %v497_v27 }
  0x16   :  { %92 = vperm.xlu1 %533, %v49_v25   ;;  %68 = vperm.xlu0 %532, %v41_v26  }
  0x18   :  { %500 = vmatpush3.bf16.msra.mxu0 %v497_v27  ;;  %525 = vmatpush3.bf16.msra.mxu1 %v497_v27 }
  0x19   :  { %502 = vmatprep.subr.bf16.mxu0 %v501_v32  ;;  %518 = vmatprep.subr.bf16.mxu1 %v501_v32 }
  0x1a   :  { %95 = vperm.xlu1 %533, %v50_v30   ;;  %71 = vperm.xlu0 %532, %v42_v31  }
  0x1c   :  { %504 = vmatpush3.bf16.msra.mxu0 %v501_v32  ;;  %526 = vmatpush3.bf16.msra.mxu1 %v501_v32 }
  0x1d   :  { %506 = vmatprep.subr.bf16.mxu0 %v505_v37  ;;  %519 = vmatprep.subr.bf16.mxu1 %v505_v37 }
  0x1e   :  { %98 = vperm.xlu1 %533, %v51_v35   ;;  %74 = vperm.xlu0 %532, %v43_v36  }
  0x20   :  { %508 = vmatpush3.bf16.msra.mxu0 %v505_v37  ;;  %527 = vmatpush3.bf16.msra.mxu1 %v505_v37 }
  0x21   :  { %510 = vmatprep.subr.bf16.mxu0 %v509_v40  ;;  %520 = vmatprep.subr.bf16.mxu1 %v509_v40 }
  0x24   :  { %512 = vmatpush3.bf16.msra.mxu0 %v509_v40  ;;  %528 = vmatpush3.bf16.msra.mxu1 %v509_v40 }
  0x81   :  { %v57_v43 = vpop.permute.xlu1 %56  ;;  %v54_v44 = vpop.permute.xlu0 %53 }
  0x82   :  { %vm101_vm0 = vcmp.eq.s32.totalorder %v57_v43, %v33_v42  ;;  %vm100_vm1 = vcmp.eq.s32.totalorder %v54_v44, %v33_v42 }
  0x83   :  { %457 = vmatprep.mubr.msk.f32.mxu0 %vm100_vm1, %v535_v45 }
  0x84   :  { %458 = vmatmul.mubr.msk.f32.vlgmr.msra.gmra.mrb[0].mxu0 %vm101_vm0, %v535_v45 }
  0x85   :  { %v81_v46 = vpop.permute.xlu1 %80  ;;  %v78_v47 = vpop.permute.xlu0 %77 }
  0x86   :  { %vm109_vm2 = vcmp.eq.s32.totalorder %v81_v46, %v33_v42  ;;  %vm108_vm3 = vcmp.eq.s32.totalorder %v78_v47, %v33_v42 }
  0x87   :  { %469 = vmatprep.mubr.msk.f32.mxu1 %vm108_vm3, %v535_v45 }
  0x88   :  { %470 = vmatmul.mubr.msk.f32.vlgmr.msra.gmra.mrb[0].mxu1 %vm109_vm2, %v535_v45 }
  0x89   :  { %v84_v48 = vpop.permute.xlu1 %83  ;;  %v60_v49 = vpop.permute.xlu0 %59 }
  0x8a   :  { %vm110_vm4 = vcmp.eq.s32.totalorder %v84_v48, %v33_v42  ;;  %vm102_vm5 = vcmp.eq.s32.totalorder %v60_v49, %v33_v42 }
  0x8b   :  { %460 = vmatprep.mubr.msk.f32.mxu0 %vm102_vm5, %v535_v45  ;;  %472 = vmatprep.mubr.msk.f32.mxu1 %vm110_vm4, %v535_v45 }
  0x8d   :  { %v87_v50 = vpop.permute.xlu1 %86  ;;  %v63_v51 = vpop.permute.xlu0 %62 }
  0x8e   :  { %vm111_vm6 = vcmp.eq.s32.totalorder %v87_v50, %v33_v42  ;;  %vm103_vm7 = vcmp.eq.s32.totalorder %v63_v51, %v33_v42 }
  0x8f   :  { %461 = vmatmul.mubr.msk.f32.gmra.mrb[2].mxu0 %vm103_vm7, %v535_v45  ;;  %473 = vmatmul.mubr.msk.f32.gmra.mrb[2].mxu1 %vm111_vm6, %v535_v45 }
  0x91   :  { %v90_v52 = vpop.permute.xlu1 %89  ;;  %v66_v53 = vpop.permute.xlu0 %65 }
  0x92   :  { %vm112_vm8 = vcmp.eq.s32.totalorder %v90_v52, %v33_v42  ;;  %vm104_vm9 = vcmp.eq.s32.totalorder %v66_v53, %v33_v42 }
  0x93   :  { %463 = vmatprep.mubr.msk.f32.mxu0 %vm104_vm9, %v535_v45  ;;  %475 = vmatprep.mubr.msk.f32.mxu1 %vm112_vm8, %v535_v45 }
  0x95   :  { %v93_v54 = vpop.permute.xlu1 %92  ;;  %v69_v55 = vpop.permute.xlu0 %68 }
  0x96   :  { %vm113_vm10 = vcmp.eq.s32.totalorder %v93_v54, %v33_v42  ;;  %vm105_vm11 = vcmp.eq.s32.totalorder %v69_v55, %v33_v42 }
  0x97   :  { %464 = vmatmul.mubr.msk.f32.gmra.mrb[4].mxu0 %vm105_vm11, %v535_v45  ;;  %476 = vmatmul.mubr.msk.f32.gmra.mrb[4].mxu1 %vm113_vm10, %v535_v45 }
  0x99   :  { %v96_v56 = vpop.permute.xlu1 %95  ;;  %v72_v57 = vpop.permute.xlu0 %71 }
  0x9a   :  { %vm114_vm12 = vcmp.eq.s32.totalorder %v96_v56, %v33_v42  ;;  %vm106_vm13 = vcmp.eq.s32.totalorder %v72_v57, %v33_v42 }
  0x9b   :  { %466 = vmatprep.mubr.msk.f32.mxu0 %vm106_vm13, %v535_v45  ;;  %478 = vmatprep.mubr.msk.f32.mxu1 %vm114_vm12, %v535_v45 }
  0x9d   :  { %v99_v58 = vpop.permute.xlu1 %98  ;;  %v75_v59 = vpop.permute.xlu0 %74 }
  0x9e   :  { %vm115_vm14 = vcmp.eq.s32.totalorder %v99_v58, %v33_v42  ;;  %vm107_vm15 = vcmp.eq.s32.totalorder %v75_v59, %v33_v42 }
  0x9f   :  { %467 = vmatmul.mubr.msk.f32.gmra.mrb[6].mxu0 %vm107_vm15, %v535_v45  ;;  %479 = vmatmul.mubr.msk.f32.gmra.mrb[6].mxu1 %vm115_vm14, %v535_v45 }
 0x157   :  { %v459_v60 = vpop.f32.mrb[0].mxu0 }
 0x158   :  { %v246_v61 = vpop.f32.mrb[1].mxu0  ;;  %342 = vst [vmem:[%s697_s2 + $0x8] sm:$0xff] %v459_v60 }
 0x159   :  { %341 = vst [vmem:[%s697_s2] sm:$0xff] %v246_v61 }
 0x15b   :  { %v471_v62 = vpop.f32.mrb[0].mxu1 }
 0x15c   :  { %v286_v63 = vpop.f32.mrb[1].mxu1  ;;  %350 = vst [vmem:[%s697_s2 + $0x48] sm:$0xff] %v471_v62 }
 0x15d   :  { %349 = vst [vmem:[%s697_s2 + $0x40] sm:$0xff] %v286_v63 }
 0x162   :  { %v462_v0 = vpop.f32.mrb[2].mxu0  ;;  %v474_v1 = vpop.f32.mrb[2].mxu1 }
 0x163   :  { %v256_v2 = vpop.f32.mrb[3].mxu0  ;;  %v296_v3 = vpop.f32.mrb[3].mxu1  ;;  %344 = vst [vmem:[%s697_s2 + $0x18] sm:$0xff] %v462_v0  ;;  %352 = vst [vmem:[%s697_s2 + $0x58] sm:$0xff] %v474_v1 }
 0x164   :  { %343 = vst [vmem:[%s697_s2 + $0x10] sm:$0xff] %v256_v2  ;;  %351 = vst [vmem:[%s697_s2 + $0x50] sm:$0xff] %v296_v3 }
 0x16a   :  { %v465_v4 = vpop.f32.mrb[4].mxu0  ;;  %v477_v5 = vpop.f32.mrb[4].mxu1 }
 0x16b   :  { %v266_v6 = vpop.f32.mrb[5].mxu0  ;;  %v306_v7 = vpop.f32.mrb[5].mxu1  ;;  %346 = vst [vmem:[%s697_s2 + $0x28] sm:$0xff] %v465_v4  ;;  %354 = vst [vmem:[%s697_s2 + $0x68] sm:$0xff] %v477_v5 }
 0x16c   :  { %345 = vst [vmem:[%s697_s2 + $0x20] sm:$0xff] %v266_v6  ;;  %353 = vst [vmem:[%s697_s2 + $0x60] sm:$0xff] %v306_v7 }
 0x172   :  { %v468_v8 = vpop.f32.mrb[6].mxu0  ;;  %v480_v9 = vpop.f32.mrb[6].mxu1 }
 0x173   :  { %v276_v10 = vpop.f32.mrb[7].mxu0  ;;  %v316_v11 = vpop.f32.mrb[7].mxu1  ;;  %348 = vst [vmem:[%s697_s2 + $0x38] sm:$0xff] %v468_v8  ;;  %356 = vst [vmem:[%s697_s2 + $0x78] sm:$0xff] %v480_v9 }
 0x174   :  { %347 = vst [vmem:[%s697_s2 + $0x30] sm:$0xff] %v276_v10  ;;  %355 = vst [vmem:[%s697_s2 + $0x70] sm:$0xff] %v316_v11 }

</bundles_post_ra>
